<compile_context>
chip_gen: v6e
topology: v6e:2x2x1
jax: 0.10.0
libtpu: 0.0.40
codegen_flags: <defaults>
</compile_context>

<pallas_src>
import functools

import jax
import jax.numpy as jnp
from jax.experimental import pallas as pl
from jax.experimental.pallas import tpu as pltpu


_WIDE = 512  # lane-dense last dim (multiple of 128) -> contiguous DMAs


def _xplor_kernel(r_ref, o_ref, *, r_onset, r_cutoff, coef_a, coef_b):
    r = r_ref[...].astype(jnp.float32)
    r2 = r * r
    d = jnp.float32(r_cutoff * r_cutoff) - r2
    # (r2_cut - r2)^2 * (r2_cut + 2*r2 - 3*r2_on) / (r2_cut - r2_on)^3
    #   == d*d * (coef_a * r2 + coef_b)   with constants folded at trace time.
    smoothed = d * d * (jnp.float32(coef_a) * r2 + jnp.float32(coef_b))
    smoothed = jnp.where(r < jnp.float32(r_cutoff), smoothed, jnp.float32(0.0))
    out = jnp.where(r < jnp.float32(r_onset), jnp.float32(1.0), smoothed)
    o_ref[...] = out.astype(o_ref.dtype)


def _block_bytes_for_device():
    """Target bytes per input block, gated by TPU generation."""
    try:
        kind = jax.devices()[0].device_kind.lower()
    except Exception:
        return 2 << 20
    # v5e: 16 MiB scoped-VMEM default -> keep 2 MiB blocks (8 MiB w/ dbl buf).
    if "v5 lite" in kind or "v5lite" in kind or "v5e" in kind:
        return 2 << 20
    # v6e / v7x (and others): 4 MiB blocks amortize per-step overhead better
    # at higher HBM bandwidth; 16 MiB total stays under the 32 MiB default.
    return 4 << 20


def xplor_cutoff_pallas(r, r_onset=3.5, r_cutoff=4.0):
    """Pallas TPU implementation of XPLOR.forward for any-shaped bond lengths."""
    r_onset = float(r_onset)
    r_cutoff = float(r_cutoff)
    assert r_onset < r_cutoff, "XPLOR requires r_onset < r_cutoff"

    orig_shape = r.shape
    n = 1
    for s in orig_shape:
        n *= int(s)
    if n == 0:
        return r

    itemsize = jnp.dtype(r.dtype).itemsize
    # Sublane alignment scales with dtype packing (8 for 4B, 16 for 2B, ...).
    sublane = 8 * max(1, 4 // itemsize)

    block_bytes = _block_bytes_for_device()
    max_tile_rows = max(sublane, block_bytes // (_WIDE * itemsize))
    max_tile_rows = (max_tile_rows // sublane) * sublane

    rows = -(-n // _WIDE)  # ceil(n / _WIDE)
    padded = (n != rows * _WIDE)

    flat = jnp.ravel(r)
    if padded:
        # Pad only up to the next multiple of _WIDE; padded entries land in
        # the hard-zero branch and are sliced away below.
        flat = jnp.pad(flat, (0, rows * _WIDE - n),
                       constant_values=r_cutoff + 1.0)
    r2d = flat.reshape(rows, _WIDE)

    if rows <= max_tile_rows:
        # Single block == full array: no (8,128) divisibility constraint,
        # no row padding needed.
        tile_rows = rows
    else:
        tile_rows = max_tile_rows
    grid = (pl.cdiv(rows, tile_rows),)  # partial edge block handled by Pallas

    # Fold constants in Python -> fewer VPU ops per element in the body.
    r2_on = r_onset * r_onset
    r2_cut = r_cutoff * r_cutoff
    inv_denom = 1.0 / (r2_cut - r2_on) ** 3
    kernel = functools.partial(
        _xplor_kernel,
        r_onset=r_onset,
        r_cutoff=r_cutoff,
        coef_a=2.0 * inv_denom,
        coef_b=(r2_cut - 3.0 * r2_on) * inv_denom,
    )

    out2d = pl.pallas_call(
        kernel,
        out_shape=jax.ShapeDtypeStruct((rows, _WIDE), r.dtype),
        grid_spec=pltpu.PrefetchScalarGridSpec(
            num_scalar_prefetch=0,
            grid=grid,
            in_specs=[pl.BlockSpec((tile_rows, _WIDE), lambda i: (i, 0))],
            out_specs=pl.BlockSpec((tile_rows, _WIDE), lambda i: (i, 0)),
        ),
        compiler_params=pltpu.CompilerParams(
            dimension_semantics=("parallel",),
        ),
        cost_estimate=pl.CostEstimate(
            flops=10 * rows * _WIDE,
            transcendentals=0,
            bytes_accessed=2 * rows * _WIDE * itemsize,
        ),
    )(r2d)

    if padded:
        return out2d.reshape(-1)[:n].reshape(orig_shape)
    return out2d.reshape(orig_shape)


def xplor_cutoff_ref(r, r_onset=3.5, r_cutoff=4.0):
    """Pure-JAX reference mirroring the PyTorch xplor_cutoff exactly."""
    r2 = r ** 2
    r2_on = r_onset ** 2
    r2_cut = r_cutoff ** 2
    smoothed = jnp.where(
        r < r_cutoff,
        (r2_cut - r2) ** 2 * (r2_cut + 2 * r2 - 3 * r2_on) / (r2_cut - r2_on) ** 3,
        0.0,
    )
    return jnp.where(r < r_onset, 1.0, smoothed)


if __name__ == "__main__":
    key = jax.random.PRNGKey(0)

    # 1) Small, non-512-aligned bond-length tensor spanning [0, 6) so all
    #    three branches (inside onset / smoothed / hard zero) are hit and the
    #    wrapper's pad/slice path is exercised.
    r = jax.random.uniform(key, (3, 1000), dtype=jnp.float32, minval=0.0, maxval=6.0)
    out = jax.block_until_ready(xplor_cutoff_pallas(r, r_onset=3.5, r_cutoff=4.0))
    ref = xplor_cutoff_ref(r, r_onset=3.5, r_cutoff=4.0)
    assert out.shape == r.shape and out.dtype == r.dtype
    assert jnp.allclose(out, ref, atol=1e-6, rtol=1e-6), "mismatch vs reference"

    # 2) Larger, 512-aligned case: no-copy fast path, multi-block grid
    #    (includes a partial edge block on v6e/v7x tile sizes).
    key2 = jax.random.PRNGKey(0)
    r_big = jax.random.uniform(
        key2, (1536, 1024), dtype=jnp.float32, minval=0.0, maxval=6.0
    )
    out_big = jax.block_until_ready(xplor_cutoff_pallas(r_big))
    ref_big = xplor_cutoff_ref(r_big)
    assert jnp.allclose(out_big, ref_big, atol=1e-6, rtol=1e-6), "mismatch (big)"

    # 3) bf16 smoke test (aligned, single block): kernel computes in f32
    #    internally and casts back to the input dtype.
    key3 = jax.random.PRNGKey(0)
    r_bf = jax.random.uniform(
        key3, (256, 512), dtype=jnp.float32, minval=0.0, maxval=6.0
    ).astype(jnp.bfloat16)
    out_bf = jax.block_until_ready(xplor_cutoff_pallas(r_bf))
    ref_bf = xplor_cutoff_ref(r_bf.astype(jnp.float32)).astype(jnp.bfloat16)
    assert out_bf.dtype == jnp.bfloat16
    assert jnp.allclose(
        out_bf.astype(jnp.float32), ref_bf.astype(jnp.float32), atol=2e-2, rtol=2e-2
    ), "mismatch (bf16)"

    print("KERNEL_OK")
</pallas_src>

<mosaic_0001>
module attributes {stable_mosaic.version = 11 : i64} {
  func.func @_xplor_kernel(%arg0: i32, %arg1: memref<6x512xf32, #tpu.memory_space<vmem>>, %arg2: memref<6x512xf32, #tpu.memory_space<vmem>>) attributes {dimension_semantics = [#tpu.dimension_semantics<parallel>], iteration_bounds = array<i64: 1>, scalar_prefetch = 0 : i64, scratch_operands = 0 : i64, tpu.core_type = #tpu.core_type<tc>, window_params = [{transform_indices = @transform_0, window_bounds = array<i64: 6, 512>}, {transform_indices = @transform_1, window_bounds = array<i64: 6, 512>}]} {
    %c0 = arith.constant 0 : index
    %c0_0 = arith.constant 0 : index
    %0 = vector.load %arg1[%c0, %c0_0] : memref<6x512xf32, #tpu.memory_space<vmem>>, vector<6x512xf32>
    %1 = arith.mulf %0, %0 : vector<6x512xf32>
    %cst = arith.constant 1.600000e+01 : f32
    %2 = vector.broadcast %cst : f32 to vector<6x512xf32>
    %3 = arith.subf %2, %1 : vector<6x512xf32>
    %4 = arith.mulf %3, %3 : vector<6x512xf32>
    %cst_1 = arith.constant 0.0379259251 : f32
    %5 = vector.broadcast %cst_1 : f32 to vector<6x512xf32>
    %6 = arith.mulf %5, %1 : vector<6x512xf32>
    %cst_2 = arith.constant -0.393481493 : f32
    %7 = vector.broadcast %cst_2 : f32 to vector<6x512xf32>
    %8 = arith.addf %6, %7 : vector<6x512xf32>
    %9 = arith.mulf %4, %8 : vector<6x512xf32>
    %cst_3 = arith.constant 4.000000e+00 : f32
    %10 = vector.broadcast %cst_3 : f32 to vector<6x512xf32>
    %11 = arith.cmpf olt, %0, %10 : vector<6x512xf32>
    %cst_4 = arith.constant 0.000000e+00 : f32
    %12 = vector.broadcast %cst_4 : f32 to vector<6x512xf32>
    %13 = arith.select %11, %9, %12 : vector<6x512xi1>, vector<6x512xf32>
    %cst_5 = arith.constant 3.500000e+00 : f32
    %14 = vector.broadcast %cst_5 : f32 to vector<6x512xf32>
    %15 = arith.cmpf olt, %0, %14 : vector<6x512xf32>
    %cst_6 = arith.constant 1.000000e+00 : f32
    %16 = vector.broadcast %cst_6 : f32 to vector<6x512xf32>
    %17 = arith.select %15, %16, %13 : vector<6x512xi1>, vector<6x512xf32>
    %c0_7 = arith.constant 0 : index
    %c0_8 = arith.constant 0 : index
    %18 = vector.load %arg2[%c0_7, %c0_8] : memref<6x512xf32, #tpu.memory_space<vmem>>, vector<6x512xf32>
    tpu.vector_store %arg2[%c0_7, %c0_8], %17 {strides = array<i32>} : memref<6x512xf32, #tpu.memory_space<vmem>>, vector<6x512xf32>,
    return
  }
  func.func @transform_0(%arg0: i32) -> (i32, i32) {
    %c0_i32 = arith.constant 0 : i32
    %c0_i32_0 = arith.constant 0 : i32
    return %arg0, %c0_i32 : i32, i32
  }
  func.func @transform_1(%arg0: i32) -> (i32, i32) {
    %c0_i32 = arith.constant 0 : i32
    %c0_i32_0 = arith.constant 0 : i32
    return %arg0, %c0_i32 : i32, i32
  }
}

</mosaic_0001>

<bundles_post_ra>
// kernel: tpu_custom_call.1
= control target key start
LH: loop header
LB: loop body
LE: loop exit
PB: predicated region body
PF: predicated region fallthrough
CT: control target
= control target key end

     0   :  { %6 = vsyncpa [#allocation3], 0  ;;  %s151_s0 = inlined_call_operand.hbm [shape: f32[6,512], index: 0, kind: input, shape index: {}]   ;;  %s152_s1 = inlined_call_operand.hbm [shape: f32[6,512], index: 1, kind: output, shape index: {}]  }
   0x1   :  { %7 = vsyncpa [#allocation4], 0  ;;  %s130_s6 = smov [#allocation2]  }
   0x2   :  { %s14_s7 = sshll.u32 %s130_s6, 4  ;;  %s15_s7 = int_to_ptr.vmem [resolvable:$true] %s14_s7 }
   0x3   :  { %s94_s8 = scalar_lea.vmem %s15_s7, 512  ;;  %p99_p1 = scmp.lt.s32.totalorder %s15_s7, %s15_s7 }
   0x4   :  { %p95_p0 = scmp.ne.s32.totalorder %s15_s7, %s94_s8  ;;  %p100_p2 = scmp.lt.s32.totalorder %s94_s8, %s94_s8 }
   0x6   :  { %p101_p3 = por %p100_p2, %p99_p1 }
   0x8   :  { %p102_p4 = pnand %p101_p3, %p95_p0 }
   0xa   :  { %105 = shalt.err (!%p102_p4)
}
   0xb   :  { %17 = dma.hbm_to_vmem [thread:$0]  %s151_s0, 512, %s15_s7, [#allocation3]  }
   0xc   :  { %126 = dma.done.wait [#allocation3], 512  }
   0xd   :  { %127 = vsyncadd [#allocation3], 4294966784  ;;  %v21_v0 = vld [vmem:[#allocation2] sm:$0x3f]  ;;  %v22_v1 = vld [vmem:[#allocation2 + $0x8] sm:$0x3f] }
   0xe   :  { %v23_v2 = vld [vmem:[#allocation2 + $0x10] sm:$0x3f]  ;;  %v25_v3 = vmul.f32 %v21_v0, %v21_v0  ;;  %v26_v4 = vmul.f32 %v22_v1, %v22_v1  ;;  %v24_v5 = vld [vmem:[#allocation2 + $0x18] sm:$0x3f]  ;;  %vm49_vm0 = vcmp.lt.f32.partialorder %v21_v0, 4.0  ;;  %vm57_vm1 = vcmp.lt.f32.partialorder %v21_v0, 3.5 }
   0xf   :  { %v27_v6 = vmul.f32 %v23_v2, %v23_v2  ;;  %vm50_vm2 = vcmp.lt.f32.partialorder %v22_v1, 4.0  ;;  %v28_v13 = vmul.f32 %v24_v5, %v24_v5  ;;  %vm58_vm3 = vcmp.lt.f32.partialorder %v22_v1, 3.5  ;;  %s131_s0 = smov [#allocation5]  }
  0x10   :  { %v29_v7 = vsub.f32 16.0, %v25_v3  ;;  %v37_v8 = vmul.f32 0.037925925, %v25_v3  ;;  %v30_v9 = vsub.f32 16.0, %v26_v4  ;;  %v38_v10 = vmul.f32 0.037925925, %v26_v4 }
  0x11   :  { %v31_v11 = vsub.f32 16.0, %v27_v6  ;;  %v39_v12 = vmul.f32 0.037925925, %v27_v6  ;;  %v32_v20 = vsub.f32 16.0, %v28_v13  ;;  %v40_v21 = vmul.f32 0.037925925, %v28_v13 }
  0x12   :  { %v33_v14 = vmul.f32 %v29_v7, %v29_v7  ;;  %v41_v15 = vadd.f32 -0.3934815, %v37_v8  ;;  %v34_v16 = vmul.f32 %v30_v9, %v30_v9  ;;  %v42_v17 = vadd.f32 -0.3934815, %v38_v10  ;;  %s75_s11 = sshll.u32 %s131_s0, 4  ;;  %s76_s11 = int_to_ptr.vmem [resolvable:$true] %s75_s11 }
  0x13   :  { %v35_v18 = vmul.f32 %v31_v11, %v31_v11  ;;  %v43_v19 = vadd.f32 -0.3934815, %v39_v12  ;;  %vm51_vm4 = vcmp.lt.f32.partialorder %v23_v2, 4.0  ;;  %vm59_vm5 = vcmp.lt.f32.partialorder %v23_v2, 3.5  ;;  %s106_s12 = scalar_lea.vmem %s76_s11, 512  ;;  %p111_p6 = scmp.lt.s32.totalorder %s76_s11, %s76_s11 }
  0x14   :  { %v45_v22 = vmul.f32 %v41_v15, %v33_v14  ;;  %v46_v23 = vmul.f32 %v42_v17, %v34_v16  ;;  %v36_v25 = vmul.f32 %v32_v20, %v32_v20  ;;  %v44_v26 = vadd.f32 -0.3934815, %v40_v21  ;;  %p107_p5 = scmp.ne.s32.totalorder %s76_s11, %s106_s12  ;;  %p112_p7 = scmp.lt.s32.totalorder %s106_s12, %s106_s12 }
  0x15   :  { %v47_v24 = vmul.f32 %v43_v19, %v35_v18  ;;  %vm52_vm6 = vcmp.lt.f32.partialorder %v24_v5, 4.0  ;;  %vm60_vm7 = vcmp.lt.f32.partialorder %v24_v5, 3.5 }
  0x16   :  { %v53_v27 = vsel %vm49_vm0, %v45_v22, 0.0  ;;  %v54_v28 = vsel %vm50_vm2, %v46_v23, 0.0  ;;  %v48_v32 = vmul.f32 %v44_v26, %v36_v25  ;;  %p113_p8 = por %p112_p7, %p111_p6 }
  0x17   :  { %v61_v29 = vsel %vm57_vm1, 1.0, %v53_v27  ;;  %v62_v30 = vsel %vm58_vm3, 1.0, %v54_v28  ;;  %v55_v31 = vsel %vm51_vm4, %v47_v24, 0.0 }
  0x18   :  { %65 = vst [vmem:[#allocation5] sm:$0x3f] %v61_v29  ;;  %66 = vst [vmem:[#allocation5 + $0x8] sm:$0x3f] %v62_v30  ;;  %v63_v33 = vsel %vm59_vm5, 1.0, %v55_v31  ;;  %v56_v34 = vsel %vm52_vm6, %v48_v32, 0.0  ;;  %p114_p9 = pnand %p113_p8, %p107_p5 }
  0x19   :  { %67 = vst [vmem:[#allocation5 + $0x10] sm:$0x3f] %v63_v33  ;;  %v64_v35 = vsel %vm60_vm7, 1.0, %v56_v34 }
  0x1a   :  { %68 = vst [vmem:[#allocation5 + $0x18] sm:$0x3f] %v64_v35 }
  0x1b   :  { %117 = shalt.err (!%p114_p9)
}
  0x1c   :  { %78 = dma.vmem_to_hbm [thread:$0]  %s76_s11, 512, %s152_s1, [#allocation4]  }
  0x1d   :  { %128 = dma.done.wait [#allocation4], 512  }
  0x1e   :  { %129 = vsyncadd [#allocation4], 4294966784 }
  0x1f   :  { %82 = vsyncpa [#allocation3], 1 }
  0x20   :  { %83 = vsyncpa [#allocation4], 1 }

</bundles_post_ra>
